<compile_context>
chip_gen: v6e
topology: v6e:2x2x1
jax: 0.10.0
libtpu: 0.0.40
codegen_flags: <defaults>
</compile_context>

<pallas_src>
import jax
import jax.numpy as jnp
from jax.experimental import pallas as pl
from jax.experimental.pallas import tpu as pltpu


def _round_up(n: int, m: int) -> int:
    return ((n + m - 1) // m) * m


def _make_autoencoder_kernel(pdims):
    """pdims: static list of 6 (k_pad, n_pad) per layer (multiples of 128)."""

    def kernel(x_ref, w_ref, b_ref, out_ref):
        # x_ref:   (block_m, k_pad0) bf16   zero-padded activations
        # w_ref:   (6, maxK, maxN)   bf16   zero-padded weight slab, (in, out) layout
        # b_ref:   (6, 1, maxN)      f32    zero-padded bias slab
        # out_ref: (block_m, n_pad5) f32
        h = x_ref[...]                                    # bf16 -> MXU input
        for layer, (kp, np_) in enumerate(pdims):
            w = w_ref[layer, :kp, :np_]                   # static, 128-aligned slice
            b = b_ref[layer, :, :np_]                     # (1, np_) f32
            acc = jnp.dot(h, w, preferred_element_type=jnp.float32) + b
            if layer not in (2, 5):                       # no ReLU at bottleneck / final
                acc = jnp.maximum(acc, 0.0)
            if layer < 5:
                h = acc.astype(jnp.bfloat16)              # bf16 inter-layer value
            else:
                h = acc                                   # keep final layer f32
        out_ref[...] = h

    return kernel


def pack_params(params):
    """Pack the 6 (W, b) pairs into two pre-padded slabs.  Call ONCE per param set."""
    assert len(params) == 6
    dims = [tuple(w.shape) for (w, _) in params]                       # (in, out)
    pdims = [(_round_up(k, 128), _round_up(n, 128)) for (k, n) in dims]
    for l in range(5):                                                 # widths must chain
        assert pdims[l][1] == pdims[l + 1][0]
    maxk = max(k for k, _ in pdims)
    maxn = max(n for _, n in pdims)
    w_slab = jnp.stack([
        jnp.pad(w.astype(jnp.bfloat16),
                ((0, maxk - w.shape[0]), (0, maxn - w.shape[1])))
        for (w, _) in params])                                         # (6, maxk, maxn) bf16
    b_slab = jnp.stack([
        jnp.pad(b.reshape(1, -1).astype(jnp.float32), ((0, 0), (0, maxn - b.size)))
        for (_, b) in params])                                         # (6, 1, maxn) f32
    return {"w_slab": w_slab, "b_slab": b_slab, "dims": dims, "pdims": pdims}


def autoencoder_forward(x, packed, *, block_m=2048):
    """x: (B, input_dim) f32; packed: output of pack_params()."""
    w_slab, b_slab = packed["w_slab"], packed["b_slab"]
    dims, pdims = packed["dims"], packed["pdims"]
    batch, input_dim = x.shape
    assert input_dim == dims[0][0]
    kp0 = pdims[0][0]            # padded input width
    n_out = dims[5][1]           # real output width (== input_dim for this module)
    np5 = pdims[5][1]            # padded output width

    # --- batch tiling: >= 2 grid steps when the batch allows (v7x megacore) ---
    rows = _round_up(batch, 8)
    if rows >= 16:
        block_m = min(block_m, _round_up(pl.cdiv(rows, 2), 8))
    block_m = max(8, _round_up(min(block_m, rows), 8))
    padded_batch = _round_up(batch, block_m)        # at most one extra block of padding
    grid = (padded_batch // block_m,)

    # Single pad op on the per-call path; bf16 halves the input DMA bytes.
    x_pad = jnp.pad(x.astype(jnp.bfloat16),
                    ((0, padded_batch - batch), (0, kp0 - input_dim)))

    flops = 2 * batch * sum(k * n for (k, n) in dims)
    bytes_accessed = int(w_slab.size * 2 + b_slab.size * 4
                         + padded_batch * kp0 * 2 + padded_batch * np5 * 4)
    cost = pl.CostEstimate(flops=flops, transcendentals=0,
                           bytes_accessed=bytes_accessed)

    out = pl.pallas_call(
        _make_autoencoder_kernel(pdims),
        out_shape=jax.ShapeDtypeStruct((padded_batch, np5), jnp.float32),
        grid=grid,
        in_specs=[
            pl.BlockSpec((block_m, kp0), lambda i: (i, 0)),       # x: pipelined, bf16
            pl.BlockSpec(w_slab.shape, lambda i: (0, 0, 0)),      # weights: VMEM-resident
            pl.BlockSpec(b_slab.shape, lambda i: (0, 0, 0)),      # biases:  VMEM-resident
        ],
        out_specs=pl.BlockSpec((block_m, np5), lambda i: (i, 0)),
        compiler_params=pltpu.CompilerParams(
            dimension_semantics=("parallel",)),
        cost_estimate=cost,
    )(x_pad, w_slab, b_slab)

    return out[:batch, :n_out]


def init_params(key, input_dim, output_dim):
    """Deterministic init matching the PyTorch layer shapes (Kaiming-uniform-ish)."""
    dims = [(input_dim, 128), (128, 64), (64, output_dim),        # encoder
            (output_dim, 64), (64, 128), (128, input_dim)]        # decoder
    params = []
    for i, (fan_in, fan_out) in enumerate(dims):
        k_w, k_b, key = jax.random.split(jax.random.fold_in(key, i), 3)
        bound = 1.0 / jnp.sqrt(fan_in)
        w = jax.random.uniform(k_w, (fan_in, fan_out), jnp.float32, -bound, bound)
        b = jax.random.uniform(k_b, (1, fan_out), jnp.float32, -bound, bound)
        params.append((w, b))
    return params


def reference_forward_f32(x, params):
    """Pure-f32 reference (matches the original PyTorch module numerics)."""
    h = x
    for i, (w, b) in enumerate(params):
        h = h @ w + b
        if i not in (2, 5):
            h = jnp.maximum(h, 0.0)
    return h


def reference_forward_bf16(x, params):
    """Reference that mimics the kernel exactly: bf16 MXU inputs, f32 accumulate,
    f32 bias/ReLU, bf16 inter-layer values, f32 final output."""
    h = x.astype(jnp.bfloat16)
    for i, (w, b) in enumerate(params):
        acc = jnp.dot(h, w.astype(jnp.bfloat16),
                      preferred_element_type=jnp.float32) + b.astype(jnp.float32)
        if i not in (2, 5):
            acc = jnp.maximum(acc, 0.0)
        h = acc.astype(jnp.bfloat16) if i < 5 else acc
    return h


if __name__ == "__main__":
    key = jax.random.PRNGKey(0)
    batch, input_dim, output_dim = 8, 32, 16

    k_x, k_p = jax.random.split(key)
    x = jax.random.normal(k_x, (batch, input_dim), jnp.float32)
    params = init_params(k_p, input_dim, output_dim)

    packed = pack_params(params)                 # packed ONCE, outside the forward path
    out = autoencoder_forward(x, packed)
    out = jax.block_until_ready(out)
    assert out.shape == (batch, input_dim)

    # Tight check vs a reference doing the same bf16-quantized / f32-accumulate math.
    ref_q = reference_forward_bf16(x, params)
    assert jnp.allclose(out, ref_q, atol=1e-4, rtol=1e-4), "mismatch vs bf16 reference"

    # Looser semantic check vs the pure-f32 PyTorch-equivalent forward
    # (difference is only bf16 weight/activation quantization).
    ref_f = reference_forward_f32(x, params)
    assert jnp.allclose(out, ref_f, atol=5e-2, rtol=5e-2), "mismatch vs f32 reference"

    print("KERNEL_OK")
</pallas_src>

<mosaic_0001>
module attributes {stable_mosaic.version = 11 : i64} {
  func.func @kernel(%arg0: i32, %arg1: memref<8x128xbf16, #tpu.memory_space<vmem>>, %arg2: memref<6x128x128xbf16, #tpu.memory_space<vmem>>, %arg3: memref<6x1x128xf32, #tpu.memory_space<vmem>>, %arg4: memref<8x128xf32, #tpu.memory_space<vmem>>) attributes {dimension_semantics = [#tpu.dimension_semantics<parallel>], iteration_bounds = array<i64: 1>, scalar_prefetch = 0 : i64, scratch_operands = 0 : i64, tpu.core_type = #tpu.core_type<tc>, window_params = [{transform_indices = @transform_0, window_bounds = array<i64: 8, 128>}, {pipeline_mode = #tpu.pipeline_mode<synchronous>, transform_indices = @transform_1, window_bounds = array<i64: 6, 128, 128>}, {pipeline_mode = #tpu.pipeline_mode<synchronous>, transform_indices = @transform_2, window_bounds = array<i64: 6, 1, 128>}, {transform_indices = @transform_3, window_bounds = array<i64: 8, 128>}]} {
    %c0 = arith.constant 0 : index
    %c0_0 = arith.constant 0 : index
    %0 = vector.load %arg1[%c0, %c0_0] : memref<8x128xbf16, #tpu.memory_space<vmem>>, vector<8x128xbf16>
    %c0_1 = arith.constant 0 : index
    %c0_2 = arith.constant 0 : index
    %c0_3 = arith.constant 0 : index
    %1 = vector.load %arg2[%c0_1, %c0_2, %c0_3] : memref<6x128x128xbf16, #tpu.memory_space<vmem>>, vector<1x128x128xbf16>
    %2 = vector.shape_cast %1 : vector<1x128x128xbf16> to vector<128x128xbf16>
    %c0_4 = arith.constant 0 : index
    %c0_5 = arith.constant 0 : index
    %c0_6 = arith.constant 0 : index
    %3 = vector.load %arg3[%c0_4, %c0_5, %c0_6] : memref<6x1x128xf32, #tpu.memory_space<vmem>>, vector<1x1x128xf32>
    %4 = vector.shape_cast %3 : vector<1x1x128xf32> to vector<1x128xf32>
    %cst = arith.constant dense<0.000000e+00> : vector<8x128xf32>
    %5 = tpu.matmul %0, %2, %cst {dimension_numbers = #tpu.dot_dimension_numbers<[1], [0], [0], [1], [0, 0, 1, 1], [], []>} : vector<8x128xbf16>, vector<128x128xbf16>, vector<8x128xf32> -> vector<8x128xf32>
    %6 = vector.broadcast %4 : vector<1x128xf32> to vector<8x128xf32>
    %7 = arith.addf %5, %6 : vector<8x128xf32>
    %cst_7 = arith.constant 0.000000e+00 : f32
    %8 = vector.broadcast %cst_7 : f32 to vector<8x128xf32>
    %9 = arith.maximumf %7, %8 : vector<8x128xf32>
    %10 = arith.truncf %9 : vector<8x128xf32> to vector<8x128xbf16>
    %c1 = arith.constant 1 : index
    %c0_8 = arith.constant 0 : index
    %c0_9 = arith.constant 0 : index
    %11 = vector.load %arg2[%c1, %c0_8, %c0_9] : memref<6x128x128xbf16, #tpu.memory_space<vmem>>, vector<1x128x128xbf16>
    %12 = vector.shape_cast %11 : vector<1x128x128xbf16> to vector<128x128xbf16>
    %c1_10 = arith.constant 1 : index
    %c0_11 = arith.constant 0 : index
    %c0_12 = arith.constant 0 : index
    %13 = vector.load %arg3[%c1_10, %c0_11, %c0_12] : memref<6x1x128xf32, #tpu.memory_space<vmem>>, vector<1x1x128xf32>
    %14 = vector.shape_cast %13 : vector<1x1x128xf32> to vector<1x128xf32>
    %cst_13 = arith.constant dense<0.000000e+00> : vector<8x128xf32>
    %15 = tpu.matmul %10, %12, %cst_13 {dimension_numbers = #tpu.dot_dimension_numbers<[1], [0], [0], [1], [0, 0, 1, 1], [], []>} : vector<8x128xbf16>, vector<128x128xbf16>, vector<8x128xf32> -> vector<8x128xf32>
    %16 = vector.broadcast %14 : vector<1x128xf32> to vector<8x128xf32>
    %17 = arith.addf %15, %16 : vector<8x128xf32>
    %cst_14 = arith.constant 0.000000e+00 : f32
    %18 = vector.broadcast %cst_14 : f32 to vector<8x128xf32>
    %19 = arith.maximumf %17, %18 : vector<8x128xf32>
    %20 = arith.truncf %19 : vector<8x128xf32> to vector<8x128xbf16>
    %c2 = arith.constant 2 : index
    %c0_15 = arith.constant 0 : index
    %c0_16 = arith.constant 0 : index
    %21 = vector.load %arg2[%c2, %c0_15, %c0_16] : memref<6x128x128xbf16, #tpu.memory_space<vmem>>, vector<1x128x128xbf16>
    %22 = vector.shape_cast %21 : vector<1x128x128xbf16> to vector<128x128xbf16>
    %c2_17 = arith.constant 2 : index
    %c0_18 = arith.constant 0 : index
    %c0_19 = arith.constant 0 : index
    %23 = vector.load %arg3[%c2_17, %c0_18, %c0_19] : memref<6x1x128xf32, #tpu.memory_space<vmem>>, vector<1x1x128xf32>
    %24 = vector.shape_cast %23 : vector<1x1x128xf32> to vector<1x128xf32>
    %cst_20 = arith.constant dense<0.000000e+00> : vector<8x128xf32>
    %25 = tpu.matmul %20, %22, %cst_20 {dimension_numbers = #tpu.dot_dimension_numbers<[1], [0], [0], [1], [0, 0, 1, 1], [], []>} : vector<8x128xbf16>, vector<128x128xbf16>, vector<8x128xf32> -> vector<8x128xf32>
    %26 = vector.broadcast %24 : vector<1x128xf32> to vector<8x128xf32>
    %27 = arith.addf %25, %26 : vector<8x128xf32>
    %28 = arith.truncf %27 : vector<8x128xf32> to vector<8x128xbf16>
    %c3 = arith.constant 3 : index
    %c0_21 = arith.constant 0 : index
    %c0_22 = arith.constant 0 : index
    %29 = vector.load %arg2[%c3, %c0_21, %c0_22] : memref<6x128x128xbf16, #tpu.memory_space<vmem>>, vector<1x128x128xbf16>
    %30 = vector.shape_cast %29 : vector<1x128x128xbf16> to vector<128x128xbf16>
    %c3_23 = arith.constant 3 : index
    %c0_24 = arith.constant 0 : index
    %c0_25 = arith.constant 0 : index
    %31 = vector.load %arg3[%c3_23, %c0_24, %c0_25] : memref<6x1x128xf32, #tpu.memory_space<vmem>>, vector<1x1x128xf32>
    %32 = vector.shape_cast %31 : vector<1x1x128xf32> to vector<1x128xf32>
    %cst_26 = arith.constant dense<0.000000e+00> : vector<8x128xf32>
    %33 = tpu.matmul %28, %30, %cst_26 {dimension_numbers = #tpu.dot_dimension_numbers<[1], [0], [0], [1], [0, 0, 1, 1], [], []>} : vector<8x128xbf16>, vector<128x128xbf16>, vector<8x128xf32> -> vector<8x128xf32>
    %34 = vector.broadcast %32 : vector<1x128xf32> to vector<8x128xf32>
    %35 = arith.addf %33, %34 : vector<8x128xf32>
    %cst_27 = arith.constant 0.000000e+00 : f32
    %36 = vector.broadcast %cst_27 : f32 to vector<8x128xf32>
    %37 = arith.maximumf %35, %36 : vector<8x128xf32>
    %38 = arith.truncf %37 : vector<8x128xf32> to vector<8x128xbf16>
    %c4 = arith.constant 4 : index
    %c0_28 = arith.constant 0 : index
    %c0_29 = arith.constant 0 : index
    %39 = vector.load %arg2[%c4, %c0_28, %c0_29] : memref<6x128x128xbf16, #tpu.memory_space<vmem>>, vector<1x128x128xbf16>
    %40 = vector.shape_cast %39 : vector<1x128x128xbf16> to vector<128x128xbf16>
    %c4_30 = arith.constant 4 : index
    %c0_31 = arith.constant 0 : index
    %c0_32 = arith.constant 0 : index
    %41 = vector.load %arg3[%c4_30, %c0_31, %c0_32] : memref<6x1x128xf32, #tpu.memory_space<vmem>>, vector<1x1x128xf32>
    %42 = vector.shape_cast %41 : vector<1x1x128xf32> to vector<1x128xf32>
    %cst_33 = arith.constant dense<0.000000e+00> : vector<8x128xf32>
    %43 = tpu.matmul %38, %40, %cst_33 {dimension_numbers = #tpu.dot_dimension_numbers<[1], [0], [0], [1], [0, 0, 1, 1], [], []>} : vector<8x128xbf16>, vector<128x128xbf16>, vector<8x128xf32> -> vector<8x128xf32>
    %44 = vector.broadcast %42 : vector<1x128xf32> to vector<8x128xf32>
    %45 = arith.addf %43, %44 : vector<8x128xf32>
    %cst_34 = arith.constant 0.000000e+00 : f32
    %46 = vector.broadcast %cst_34 : f32 to vector<8x128xf32>
    %47 = arith.maximumf %45, %46 : vector<8x128xf32>
    %48 = arith.truncf %47 : vector<8x128xf32> to vector<8x128xbf16>
    %c5 = arith.constant 5 : index
    %c0_35 = arith.constant 0 : index
    %c0_36 = arith.constant 0 : index
    %49 = vector.load %arg2[%c5, %c0_35, %c0_36] : memref<6x128x128xbf16, #tpu.memory_space<vmem>>, vector<1x128x128xbf16>
    %50 = vector.shape_cast %49 : vector<1x128x128xbf16> to vector<128x128xbf16>
    %c5_37 = arith.constant 5 : index
    %c0_38 = arith.constant 0 : index
    %c0_39 = arith.constant 0 : index
    %51 = vector.load %arg3[%c5_37, %c0_38, %c0_39] : memref<6x1x128xf32, #tpu.memory_space<vmem>>, vector<1x1x128xf32>
    %52 = vector.shape_cast %51 : vector<1x1x128xf32> to vector<1x128xf32>
    %cst_40 = arith.constant dense<0.000000e+00> : vector<8x128xf32>
    %53 = tpu.matmul %48, %50, %cst_40 {dimension_numbers = #tpu.dot_dimension_numbers<[1], [0], [0], [1], [0, 0, 1, 1], [], []>} : vector<8x128xbf16>, vector<128x128xbf16>, vector<8x128xf32> -> vector<8x128xf32>
    %54 = vector.broadcast %52 : vector<1x128xf32> to vector<8x128xf32>
    %55 = arith.addf %53, %54 : vector<8x128xf32>
    %c0_41 = arith.constant 0 : index
    %c0_42 = arith.constant 0 : index
    %56 = vector.load %arg4[%c0_41, %c0_42] : memref<8x128xf32, #tpu.memory_space<vmem>>, vector<8x128xf32>
    tpu.vector_store %arg4[%c0_41, %c0_42], %55 {strides = array<i32>} : memref<8x128xf32, #tpu.memory_space<vmem>>, vector<8x128xf32>,
    return
  }
  func.func @transform_0(%arg0: i32) -> (i32, i32) {
    %c0_i32 = arith.constant 0 : i32
    %c0_i32_0 = arith.constant 0 : i32
    return %arg0, %c0_i32 : i32, i32
  }
  func.func @transform_1(%arg0: i32) -> (i32, i32, i32) {
    %c0_i32 = arith.constant 0 : i32
    %c0_i32_0 = arith.constant 0 : i32
    %c0_i32_1 = arith.constant 0 : i32
    %c0_i32_2 = arith.constant 0 : i32
    return %c0_i32, %c0_i32_0, %c0_i32_1 : i32, i32, i32
  }
  func.func @transform_2(%arg0: i32) -> (i32, i32, i32) {
    %c0_i32 = arith.constant 0 : i32
    %c0_i32_0 = arith.constant 0 : i32
    %c0_i32_1 = arith.constant 0 : i32
    %c0_i32_2 = arith.constant 0 : i32
    return %c0_i32, %c0_i32_0, %c0_i32_1 : i32, i32, i32
  }
  func.func @transform_3(%arg0: i32) -> (i32, i32) {
    %c0_i32 = arith.constant 0 : i32
    %c0_i32_0 = arith.constant 0 : i32
    return %arg0, %c0_i32 : i32, i32
  }
}

</mosaic_0001>

<bundles_post_ra>
// kernel: tpu_custom_call.1
= control target key start
LH: loop header
LB: loop body
LE: loop exit
PB: predicated region body
PF: predicated region fallthrough
CT: control target
= control target key end

     0   :  { %8 = vsyncpa [#allocation3], 0  ;;  %s1232_s0 = inlined_call_operand.hbm [shape: bf16[8,128], index: 0, kind: input, shape index: {}]   ;;  %s1233_s1 = inlined_call_operand.hbm [shape: bf16[6,128,128], index: 1, kind: input, shape index: {}]   ;;  %s1234_s2 = inlined_call_operand.hbm [shape: f32[6,1,128], index: 2, kind: input, shape index: {}]   ;;  %s1235_s3 = inlined_call_operand.hbm [shape: f32[8,128], index: 3, kind: output, shape index: {}]  }
   0x1   :  { %9 = vsyncpa [#allocation6], 0 }
   0x2   :  { %10 = vsyncpa [#allocation4], 0  ;;  %s1130_s12 = smov [#allocation5]  }
   0x3   :  { %s26_s13 = sshll.u32 %s1130_s12, 4  ;;  %s27_s13 = int_to_ptr.vmem [resolvable:$true] %s26_s13 }
   0x4   :  { %s1052_s14 = scalar_lea.vmem %s27_s13, 6144  ;;  %p1057_p1 = scmp.lt.s32.totalorder %s27_s13, %s27_s13 }
   0x5   :  { %p1053_p0 = scmp.ne.s32.totalorder %s27_s13, %s1052_s14  ;;  %p1058_p2 = scmp.lt.s32.totalorder %s1052_s14, %s1052_s14 }
   0x7   :  { %p1059_p3 = por %p1058_p2, %p1057_p1 }
   0x9   :  { %p1060_p4 = pnand %p1059_p3, %p1053_p0 }
   0xb   :  { %1063 = shalt.err (!%p1060_p4)
}
   0xc   :  { %s1131_s15 = smov 64   ;;  %s1132_s16 = smov 4  }
   0xd   :  { %32 = dma.hbm_to_vmem [thread:$0]  %s1233_s1, 6144, %s27_s13, [#allocation6], %s1131_s15, %s1131_s15, %s1132_s16  }
   0xe   :  { %s1133_s19 = smov [#allocation2]   ;;  %s1134_s21 = smov [#allocation7]  }
   0xf   :  { %s17_s20 = sshll.u32 %s1133_s19, 4  ;;  %s38_s22 = sshll.u32 %s1134_s21, 4  ;;  %s18_s20 = int_to_ptr.vmem [resolvable:$true] %s17_s20  ;;  %s39_s22 = int_to_ptr.vmem [resolvable:$true] %s38_s22 }
  0x10   :  { %s1072_s23 = scalar_lea.vmem %s18_s20, 64  ;;  %p1077_p6 = scmp.lt.s32.totalorder %s18_s20, %s18_s20 }
  0x11   :  { %p1073_p5 = scmp.ne.s32.totalorder %s18_s20, %s1072_s23  ;;  %p1078_p7 = scmp.lt.s32.totalorder %s1072_s23, %s1072_s23 }
  0x13   :  { %p1079_p8 = por %p1078_p7, %p1077_p6 }
  0x15   :  { %p1080_p9 = pnand %p1079_p8, %p1073_p5 }
  0x17   :  { %1083 = shalt.err (!%p1080_p9)
}
  0x18   :  { %20 = dma.hbm_to_vmem [thread:$0]  %s1232_s0, 64, %s18_s20, [#allocation3]  }
  0x19   :  { %s1092_s26 = scalar_lea.vmem %s39_s22, 96  ;;  %p1097_p11 = scmp.lt.s32.totalorder %s39_s22, %s39_s22 }
  0x1a   :  { %p1093_p10 = scmp.ne.s32.totalorder %s39_s22, %s1092_s26  ;;  %p1098_p12 = scmp.lt.s32.totalorder %s1092_s26, %s1092_s26 }
  0x1c   :  { %p1099_p13 = por %p1098_p12, %p1097_p11 }
  0x1e   :  { %p1100_p0 = pnand %p1099_p13, %p1093_p10 }
  0x20   :  { %1103 = shalt.err (!%p1100_p0)
}
  0x21   :  { %s1135_s1 = smov 16   ;;  %s1136_s27 = smov 1  }
  0x22   :  { %44 = dma.hbm_to_vmem [thread:$0]  %s1234_s2, 96, %s39_s22, [#allocation6], %s1135_s1, %s1135_s1, %s1136_s27  }
  0x23   :  { %1124 = dma.done.wait [#allocation3], 64  }
  0x24   :  { %1125 = vsyncadd [#allocation3], 4294967232 }
  0x25   :  { %1126 = dma.done.wait [#allocation6], 6240  }
  0x26   :  { %1127 = vsyncadd [#allocation6], 4294961056  ;;  %v1137_v0 = vmov 0.0   ;;  %vm1138_vm0 = vmmov 0   ;;  %v996_v1 = vld [vmem:[#allocation5 + $0x38] sm:$0xff]   ;;  %v997_v2 = vld [vmem:[#allocation5 + $0x30] sm:$0xff]  }
  0x27   :  { %866 = vmatprep.subr.bf16.mxu0 %v1137_v0  ;;  %882 = vmatprep.mubr.msk.bf16.mxu0 %vm1138_vm0, %v1137_v0  ;;  %v998_v3 = vld [vmem:[#allocation5 + $0x28] sm:$0xff]   ;;  %v1004_v4 = vld [vmem:[#allocation5 + $0x78] sm:$0xff]   ;;  %v999_v5 = vld [vmem:[#allocation5 + $0x20] sm:$0xff]   ;;  %s1139_s0 = smov [#allocation8]  }
  0x28   :  { %886 = vmatprep.subr.bf16.mxu1 %v1137_v0  ;;  %902 = vmatprep.mubr.msk.bf16.mxu1 %vm1138_vm0, %v1137_v0  ;;  %v1005_v6 = vld [vmem:[#allocation5 + $0x70] sm:$0xff]   ;;  %v1000_v7 = vld [vmem:[#allocation5 + $0x18] sm:$0xff]   ;;  %v1006_v8 = vld [vmem:[#allocation5 + $0x68] sm:$0xff]   ;;  %s748_s2 = sshll.u32 %s1139_s0, 4  ;;  %s749_s2 = int_to_ptr.vmem [resolvable:$true] %s748_s2 }
  0x29   :  { %867 = vmatpush3.bf16.msra.mxu0 %v996_v1  ;;  %887 = vmatpush3.bf16.msra.mxu1 %v1004_v4  ;;  %v1001_v9 = vld [vmem:[#allocation5 + $0x10] sm:$0xff]   ;;  %v1007_v10 = vld [vmem:[#allocation5 + $0x60] sm:$0xff]   ;;  %v1002_v11 = vld [vmem:[#allocation5 + $0x8] sm:$0xff]   ;;  %s1104_s30 = scalar_lea.vmem %s749_s2, 128  ;;  %p1109_p2 = scmp.lt.s32.totalorder %s749_s2, %s749_s2 }
  0x2a   :  { %868 = vmatprep.subr.bf16.mxu0 %v1137_v0  ;;  %888 = vmatprep.subr.bf16.mxu1 %v1137_v0  ;;  %v1008_v12 = vld [vmem:[#allocation5 + $0x58] sm:$0xff]   ;;  %v1003_v13 = vld [vmem:[#allocation5] sm:$0xff]   ;;  %v1009_v14 = vld [vmem:[#allocation5 + $0x50] sm:$0xff]   ;;  %p1105_p1 = scmp.ne.s32.totalorder %s749_s2, %s1104_s30  ;;  %p1110_p3 = scmp.lt.s32.totalorder %s1104_s30, %s1104_s30 }
  0x2b   :  { %v55_v15 = vld [vmem:[#allocation2] sm:$0xf]  ;;  %v1010_v16 = vld [vmem:[#allocation5 + $0x48] sm:$0xff]   ;;  %v1011_v17 = vld [vmem:[#allocation5 + $0x40] sm:$0xff]  }
  0x2c   :  { %v1012_v18 = vld [vmem:[#allocation5 + $0xb8] sm:$0xff]   ;;  %v1013_v19 = vld [vmem:[#allocation5 + $0xb0] sm:$0xff]   ;;  %v1014_v20 = vld [vmem:[#allocation5 + $0xa8] sm:$0xff]   ;;  %p1111_p4 = por %p1110_p3, %p1109_p2 }
  0x2d   :  { %869 = vmatpush3.bf16.msra.mxu0 %v997_v2  ;;  %889 = vmatpush3.bf16.msra.mxu1 %v1005_v6  ;;  %v1015_v21 = vld [vmem:[#allocation5 + $0xa0] sm:$0xff]   ;;  %v1016_v22 = vld [vmem:[#allocation5 + $0x98] sm:$0xff]   ;;  %v1017_v23 = vld [vmem:[#allocation5 + $0x90] sm:$0xff]  }
  0x2e   :  { %870 = vmatprep.subr.bf16.mxu0 %v1137_v0  ;;  %890 = vmatprep.subr.bf16.mxu1 %v1137_v0  ;;  %v758_v24 = vld [vmem:[#allocation7] ss:$0 sm:$0xff]  ;;  %v1018_v32 = vld [vmem:[#allocation5 + $0x88] sm:$0xff]   ;;  %v1020_v34 = vld [vmem:[#allocation5 + $0xf8] sm:$0xff]   ;;  %p1112_p5 = pnand %p1111_p4, %p1105_p1 }
  0x2f   :  { %v1019_v33 = vld [vmem:[#allocation5 + $0x80] sm:$0xff]   ;;  %v1021_v35 = vld [vmem:[#allocation5 + $0xf0] sm:$0xff]   ;;  %v1022_v36 = vld [vmem:[#allocation5 + $0xe8] sm:$0xff]  }
  0x30   :  { %v1023_v37 = vld [vmem:[#allocation5 + $0xe0] sm:$0xff]   ;;  %v1024_v38 = vld [vmem:[#allocation5 + $0xd8] sm:$0xff]   ;;  %v1025_v39 = vld [vmem:[#allocation5 + $0xd0] sm:$0xff]  }
  0x31   :  { %871 = vmatpush3.bf16.msra.mxu0 %v998_v3  ;;  %891 = vmatpush3.bf16.msra.mxu1 %v1006_v8  ;;  %v1026_v40 = vld [vmem:[#allocation5 + $0xc8] sm:$0xff]   ;;  %v767_v41 = vld [vmem:[#allocation7 + $0x1] ss:$0 sm:$0xff]  ;;  %v1028_v50 = vld [vmem:[#allocation5 + $0x138] sm:$0xff]  }
  0x32   :  { %872 = vmatprep.subr.bf16.mxu0 %v1137_v0  ;;  %892 = vmatprep.subr.bf16.mxu1 %v1137_v0  ;;  %v1027_v49 = vld [vmem:[#allocation5 + $0xc0] sm:$0xff]   ;;  %v1029_v51 = vld [vmem:[#allocation5 + $0x130] sm:$0xff]   ;;  %v1030_v52 = vld [vmem:[#allocation5 + $0x128] sm:$0xff]  }
  0x33   :  { %v1031_v53 = vld [vmem:[#allocation5 + $0x120] sm:$0xff]   ;;  %v1032_v54 = vld [vmem:[#allocation5 + $0x118] sm:$0xff]   ;;  %v1033_v55 = vld [vmem:[#allocation5 + $0x110] sm:$0xff]  }
  0x34   :  { %v776_v56 = vld [vmem:[#allocation7 + $0x2] ss:$0 sm:$0xff]  ;;  %v1034_v63 = vld [vmem:[#allocation5 + $0x108] sm:$0xff]   ;;  %v1036_v2 = vld [vmem:[#allocation5 + $0x178] sm:$0xff]  }
  0x35   :  { %873 = vmatpush3.bf16.msra.mxu0 %v999_v5  ;;  %893 = vmatpush3.bf16.msra.mxu1 %v1007_v10  ;;  %v1035_v1 = vld [vmem:[#allocation5 + $0x100] sm:$0xff]   ;;  %v1037_v3 = vld [vmem:[#allocation5 + $0x170] sm:$0xff]   ;;  %v1038_v4 = vld [vmem:[#allocation5 + $0x168] sm:$0xff]  }
  0x36   :  { %874 = vmatprep.subr.bf16.mxu0 %v1137_v0  ;;  %894 = vmatprep.subr.bf16.mxu1 %v1137_v0  ;;  %v1039_v5 = vld [vmem:[#allocation5 + $0x160] sm:$0xff]   ;;  %v1040_v6 = vld [vmem:[#allocation5 + $0x158] sm:$0xff]  }
  0x37   :  { %v785_v8 = vld [vmem:[#allocation7 + $0x3] ss:$0 sm:$0xff] }
  0x39   :  { %875 = vmatpush3.bf16.msra.mxu0 %v1000_v7  ;;  %895 = vmatpush3.bf16.msra.mxu1 %v1008_v12  ;;  %v1041_v7 = vld [vmem:[#allocation5 + $0x150] sm:$0xff]  }
  0x3a   :  { %876 = vmatprep.subr.bf16.mxu0 %v1137_v0  ;;  %896 = vmatprep.subr.bf16.mxu1 %v1137_v0 }
  0x3d   :  { %877 = vmatpush3.bf16.msra.mxu0 %v1001_v9  ;;  %897 = vmatpush3.bf16.msra.mxu1 %v1009_v14 }
  0x3e   :  { %878 = vmatprep.subr.bf16.mxu0 %v1137_v0  ;;  %898 = vmatprep.subr.bf16.mxu1 %v1137_v0 }
  0x41   :  { %879 = vmatpush3.bf16.msra.mxu0 %v1002_v11  ;;  %899 = vmatpush3.bf16.msra.mxu1 %v1010_v16  ;;  %v1042_v16 = vld [vmem:[#allocation5 + $0x148] sm:$0xff]  }
  0x42   :  { %880 = vmatprep.subr.bf16.mxu0 %v1137_v0  ;;  %900 = vmatprep.subr.bf16.mxu1 %v1137_v0 }
  0x45   :  { %881 = vmatpush3.bf16.msra.mxu0 %v1003_v13  ;;  %901 = vmatpush3.bf16.msra.mxu1 %v1011_v17  ;;  %v1043_v17 = vld [vmem:[#allocation5 + $0x140] sm:$0xff]  }
  0x46   :  { %906 = vmatprep.subr.bf16.mxu0 %v1137_v0  ;;  %926 = vmatprep.subr.bf16.mxu1 %v1137_v0 }
  0x48   :  { %883 = vmatmul.mubr.bf16.vlgmr.msra.gmra.mxu0 %v55_v15 }
  0x49   :  { %922 = vmatprep.mubr.msk.bf16.mxu0 %vm1138_vm0, %v1137_v0  ;;  %907 = vmatpush3.bf16.msra.mxu0 %v1012_v18  ;;  %v794_v18 = vld [vmem:[#allocation7 + $0x4] ss:$0 sm:$0xff] }
  0x4a   :  { %908 = vmatprep.subr.bf16.mxu0 %v1137_v0 }
  0x4d   :  { %909 = vmatpush3.bf16.msra.mxu0 %v1013_v19 }
  0x4e   :  { %910 = vmatprep.subr.bf16.mxu0 %v1137_v0 }
  0x51   :  { %911 = vmatpush3.bf16.msra.mxu0 %v1014_v20 }
  0x52   :  { %912 = vmatprep.subr.bf16.mxu0 %v1137_v0 }
  0x55   :  { %913 = vmatpush3.bf16.msra.mxu0 %v1015_v21 }
  0x56   :  { %914 = vmatprep.subr.bf16.mxu0 %v1137_v0 }
  0x59   :  { %915 = vmatpush3.bf16.msra.mxu0 %v1016_v22 }
  0x5a   :  { %916 = vmatprep.subr.bf16.mxu0 %v1137_v0 }
  0x5d   :  { %917 = vmatpush3.bf16.msra.mxu0 %v1017_v23 }
  0x5e   :  { %918 = vmatprep.subr.bf16.mxu0 %v1137_v0 }
  0x61   :  { %919 = vmatpush3.bf16.msra.mxu0 %v1018_v32 }
  0x62   :  { %920 = vmatprep.subr.bf16.mxu0 %v1137_v0 }
  0x65   :  { %921 = vmatpush3.bf16.msra.mxu0 %v1019_v33 }
  0x66   :  { %946 = vmatprep.subr.bf16.mxu0 %v1137_v0 }
 0x108   :  { %v161_v25 = vpop.f32.mrf.mxu0 }
 0x109   :  { %v162_v26 = vadd.f32 %v758_v24, %v161_v25 }
 0x10a   :  { %v884_v27 = vpop.f32.mrf.mxu0 }
 0x10b   :  { %v167_v28 = vmax.f32 %v162_v26, 0.0  ;;  %v803_v26 = vld [vmem:[#allocation7 + $0x5] ss:$0 sm:$0xff] }
 0x10c   :  { %v164_v29 = vpop.f32.mrf.mxu0 }
 0x10d   :  { %v168_v30 = vpack.c.bf16 %v167_v28, %v167_v28 }
 0x10e   :  { %v885_v31 = vpop.f32.mrf.mxu0 }
 0x10f   :  { %903 = vmatmul.mubr.bf16.vlgmr.msra.gmra.mxu1 %v168_v30 }
 0x110   :  { %942 = vmatprep.mubr.msk.bf16.mxu1 %vm1138_vm0, %v1137_v0  ;;  %927 = vmatpush3.bf16.msra.mxu1 %v1020_v34 }
 0x111   :  { %928 = vmatprep.subr.bf16.mxu1 %v1137_v0 }
 0x114   :  { %929 = vmatpush3.bf16.msra.mxu1 %v1021_v35 }
 0x115   :  { %930 = vmatprep.subr.bf16.mxu1 %v1137_v0 }
 0x118   :  { %931 = vmatpush3.bf16.msra.mxu1 %v1022_v36 }
 0x119   :  { %932 = vmatprep.subr.bf16.mxu1 %v1137_v0 }
 0x11c   :  { %933 = vmatpush3.bf16.msra.mxu1 %v1023_v37 }
 0x11d   :  { %934 = vmatprep.subr.bf16.mxu1 %v1137_v0 }
 0x120   :  { %935 = vmatpush3.bf16.msra.mxu1 %v1024_v38 }
 0x121   :  { %936 = vmatprep.subr.bf16.mxu1 %v1137_v0 }
 0x124   :  { %937 = vmatpush3.bf16.msra.mxu1 %v1025_v39 }
 0x125   :  { %938 = vmatprep.subr.bf16.mxu1 %v1137_v0 }
 0x128   :  { %939 = vmatpush3.bf16.msra.mxu1 %v1026_v40 }
 0x129   :  { %940 = vmatprep.subr.bf16.mxu1 %v1137_v0 }
 0x12c   :  { %941 = vmatpush3.bf16.msra.mxu1 %v1027_v49 }
 0x12d   :  { %966 = vmatprep.subr.bf16.mxu1 %v1137_v0 }
 0x1cf   :  { %v276_v42 = vpop.f32.mrf.mxu1 }
 0x1d0   :  { %v277_v43 = vadd.f32 %v767_v41, %v276_v42 }
 0x1d1   :  { %v904_v44 = vpop.f32.mrf.mxu1 }
 0x1d2   :  { %v282_v45 = vmax.f32 %v277_v43, 0.0 }
 0x1d3   :  { %v279_v46 = vpop.f32.mrf.mxu1 }
 0x1d4   :  { %v283_v47 = vpack.c.bf16 %v282_v45, %v282_v45 }
 0x1d5   :  { %v905_v48 = vpop.f32.mrf.mxu1 }
 0x1d6   :  { %923 = vmatmul.mubr.bf16.vlgmr.msra.gmra.mxu0 %v283_v47 }
 0x1d7   :  { %962 = vmatprep.mubr.msk.bf16.mxu0 %vm1138_vm0, %v1137_v0  ;;  %947 = vmatpush3.bf16.msra.mxu0 %v1028_v50 }
 0x1d8   :  { %948 = vmatprep.subr.bf16.mxu0 %v1137_v0 }
 0x1db   :  { %949 = vmatpush3.bf16.msra.mxu0 %v1029_v51 }
 0x1dc   :  { %950 = vmatprep.subr.bf16.mxu0 %v1137_v0 }
 0x1df   :  { %951 = vmatpush3.bf16.msra.mxu0 %v1030_v52 }
 0x1e0   :  { %952 = vmatprep.subr.bf16.mxu0 %v1137_v0 }
 0x1e3   :  { %953 = vmatpush3.bf16.msra.mxu0 %v1031_v53 }
 0x1e4   :  { %954 = vmatprep.subr.bf16.mxu0 %v1137_v0 }
 0x1e7   :  { %955 = vmatpush3.bf16.msra.mxu0 %v1032_v54 }
 0x1e8   :  { %956 = vmatprep.subr.bf16.mxu0 %v1137_v0 }
 0x1eb   :  { %957 = vmatpush3.bf16.msra.mxu0 %v1033_v55 }
 0x1ec   :  { %958 = vmatprep.subr.bf16.mxu0 %v1137_v0 }
 0x1ef   :  { %959 = vmatpush3.bf16.msra.mxu0 %v1034_v63 }
 0x1f0   :  { %960 = vmatprep.subr.bf16.mxu0 %v1137_v0 }
 0x1f3   :  { %961 = vmatpush3.bf16.msra.mxu0 %v1035_v1 }
 0x296   :  { %v391_v57 = vpop.f32.mrf.mxu0 }
 0x297   :  { %v392_v58 = vadd.f32 %v776_v56, %v391_v57 }
 0x298   :  { %v924_v59 = vpop.f32.mrf.mxu0 }
 0x299   :  { %v397_v60 = vpack.c.bf16 %v392_v58, %v392_v58 }
 0x29a   :  { %v394_v61 = vpop.f32.mrf.mxu0 }
 0x29b   :  { %943 = vmatmul.mubr.bf16.vlgmr.msra.gmra.mxu1 %v397_v60 }
 0x29c   :  { %v925_v62 = vpop.f32.mrf.mxu0  ;;  %982 = vmatprep.mubr.msk.bf16.mxu1 %vm1138_vm0, %v1137_v0  ;;  %967 = vmatpush3.bf16.msra.mxu1 %v1036_v2 }
 0x29d   :  { %968 = vmatprep.subr.bf16.mxu1 %v1137_v0 }
 0x2a0   :  { %969 = vmatpush3.bf16.msra.mxu1 %v1037_v3 }
 0x2a1   :  { %970 = vmatprep.subr.bf16.mxu1 %v1137_v0 }
 0x2a4   :  { %971 = vmatpush3.bf16.msra.mxu1 %v1038_v4 }
 0x2a5   :  { %972 = vmatprep.subr.bf16.mxu1 %v1137_v0 }
 0x2a8   :  { %973 = vmatpush3.bf16.msra.mxu1 %v1039_v5 }
 0x2a9   :  { %974 = vmatprep.subr.bf16.mxu1 %v1137_v0 }
 0x2ac   :  { %975 = vmatpush3.bf16.msra.mxu1 %v1040_v6 }
 0x2ad   :  { %976 = vmatprep.subr.bf16.mxu1 %v1137_v0 }
 0x2b0   :  { %977 = vmatpush3.bf16.msra.mxu1 %v1041_v7 }
 0x2b1   :  { %978 = vmatprep.subr.bf16.mxu1 %v1137_v0 }
 0x2b4   :  { %979 = vmatpush3.bf16.msra.mxu1 %v1042_v16 }
 0x2b5   :  { %980 = vmatprep.subr.bf16.mxu1 %v1137_v0 }
 0x2b8   :  { %981 = vmatpush3.bf16.msra.mxu1 %v1043_v17 }
 0x35b   :  { %v505_v9 = vpop.f32.mrf.mxu1 }
 0x35c   :  { %v506_v10 = vadd.f32 %v785_v8, %v505_v9 }
 0x35d   :  { %v944_v11 = vpop.f32.mrf.mxu1 }
 0x35e   :  { %v511_v12 = vmax.f32 %v506_v10, 0.0 }
 0x35f   :  { %v508_v13 = vpop.f32.mrf.mxu1 }
 0x360   :  { %v512_v14 = vpack.c.bf16 %v511_v12, %v511_v12 }
 0x361   :  { %v945_v15 = vpop.f32.mrf.mxu1 }
 0x362   :  { %963 = vmatmul.mubr.bf16.vlgmr.msra.gmra.mxu0 %v512_v14 }
 0x422   :  { %v620_v19 = vpop.f32.mrf.mxu0 }
 0x423   :  { %v621_v20 = vadd.f32 %v794_v18, %v620_v19 }
 0x424   :  { %v964_v21 = vpop.f32.mrf.mxu0 }
 0x425   :  { %v626_v22 = vmax.f32 %v621_v20, 0.0 }
 0x426   :  { %v623_v23 = vpop.f32.mrf.mxu0 }
 0x427   :  { %v627_v24 = vpack.c.bf16 %v626_v22, %v626_v22 }
 0x428   :  { %v965_v25 = vpop.f32.mrf.mxu0 }
 0x429   :  { %983 = vmatmul.mubr.bf16.vlgmr.msra.gmra.mxu1 %v627_v24 }
 0x4e9   :  { %v735_v27 = vpop.f32.mrf.mxu1 }
 0x4ea   :  { %v736_v28 = vadd.f32 %v803_v26, %v735_v27 }
 0x4eb   :  { %v984_v29 = vpop.f32.mrf.mxu1 }
 0x4ec   :  { %741 = vst [vmem:[#allocation8] sm:$0xff] %v736_v28 }
 0x4ed   :  { %v738_v0 = vpop.f32.mrf.mxu1 }
 0x4ee   :  { %1115 = shalt.err (!%p1112_p5)
}
 0x4ef   :  { %751 = dma.vmem_to_hbm [thread:$0]  %s749_s2, 128, %s1235_s3, [#allocation4]   ;;  %v985_v30 = vpop.f32.mrf.mxu1 }
 0x4f0   :  { %1128 = dma.done.wait [#allocation4], 128  }
 0x4f1   :  { %1129 = vsyncadd [#allocation4], 4294967168 }
 0x4f2   :  { %755 = vsyncpa [#allocation3], 1 }
 0x4f3   :  { %756 = vsyncpa [#allocation6], 1 }
 0x4f4   :  { %757 = vsyncpa [#allocation4], 1 }

</bundles_post_ra>
